<compile_context>
chip_gen: v5e
topology: v5e:2x2
jax: 0.10.0
libtpu: 0.0.40
codegen_flags: <defaults>
</compile_context>

<pallas_src>
import functools

import jax
import jax.numpy as jnp
from jax.experimental import pallas as pl
from jax.experimental.pallas import tpu as pltpu


def _round_up(x: int, m: int) -> int:
    return (x + m - 1) // m * m


def _vmem_budgets():
    """(double-buffered input budget, vmem_limit_bytes) for this chip."""
    cap = None
    try:
        cap = pltpu.get_tpu_info().vmem_capacity_bytes
    except Exception:
        cap = None
    if cap is not None and cap >= 100 * 1024 * 1024:
        # v5e / v6e: 128 MiB physical VMEM per TensorCore.
        return 40 * 1024 * 1024, 96 * 1024 * 1024
    # v7x (64 MiB per TensorCore) or unknown chip: stay conservative.
    return 26 * 1024 * 1024, 48 * 1024 * 1024


def _ndvi_w2v_kernel(w_ref, f_ref, o_ref, acc_ref, wsum_ref, *, D: int, g: int):
    # w_ref   : (b_tile, tg_tile, g)       packed per-timestep weights
    # f_ref   : (b_tile, tg_tile, g*D)     lane-packed features (g steps / 128 lanes)
    # o_ref   : (b_tile, D)                same block for every T step
    # acc_ref : (b_tile, g*D) f32 scratch  lane-packed  Σ_t w·f
    # wsum_ref: (b_tile, 1)   f32 scratch  Σ_t w
    k = pl.program_id(1)

    @pl.when(k == 0)
    def _init():
        acc_ref[...] = jnp.zeros_like(acc_ref)
        wsum_ref[...] = jnp.zeros_like(wsum_ref)

    f = f_ref[...].astype(jnp.float32)        # (b, tg, g*D)
    w = w_ref[...].astype(jnp.float32)        # (b, tg, g)

    # One VPU broadcast-multiply + sublane reduce per lane group (g is a small
    # compile-time constant, <= 8).  Partial results are written back at their
    # natural lane offset, so the hot loop needs no cross-lane rotates; groups
    # are folded down to D lanes exactly once in the finalize.
    for j in range(g):
        wj = w[:, :, j:j + 1]                 # (b, tg, 1)
        fj = f[:, :, j * D:(j + 1) * D]       # (b, tg, D)
        acc_ref[:, j * D:(j + 1) * D] += jnp.sum(wj * fj, axis=1)

    wsum_ref[...] += jnp.sum(jnp.sum(w, axis=2, keepdims=True), axis=1)  # (b, 1)

    @pl.when(k == pl.num_programs(1) - 1)
    def _finalize():
        folded = acc_ref[:, 0:D]              # (b, D)
        for j in range(1, g):
            folded = folded + acc_ref[:, j * D:(j + 1) * D]
        # Exact reciprocal so results closely match the reference.
        inv = pl.reciprocal(wsum_ref[...], approx=False)   # (b, 1)
        o_ref[...] = (folded * inv).astype(o_ref.dtype)


def ndvi_w2v_bottleneck(features: jax.Array, weight: jax.Array) -> jax.Array:
    """features: (B, T, D), weight: (B, T) -> weighted mean over T (torch-squeezed)."""
    B, T, D = features.shape
    assert weight.shape == (B, T)
    out_dtype = features.dtype

    isf = jnp.dtype(features.dtype).itemsize
    isw = jnp.dtype(weight.dtype).itemsize
    iso = jnp.dtype(out_dtype).itemsize

    # ---- lane packing -----------------------------------------------------
    # Pack g consecutive timesteps into the 128-lane dim when D < 128 (g is
    # capped at 8 to bound the unrolled group loop; typical word2vec dims
    # 16/32/64 fill the vreg exactly).
    g = min(8, max(1, 128 // D)) if D < 128 else 1
    Dp = g * D                                 # packed feature width
    Tg = pl.cdiv(T, g)                         # packed time length

    # ---- VMEM accounting (lane-padded!) -----------------------------------
    lanes_f = _round_up(Dp, 128)               # feature block lane width in VMEM
    lanes_w = 128                              # (b, tg, g) weight block pads g -> 128
    # Per (b, tg) sublane row: double-buffered feature + weight input blocks,
    # plus a one-shot f32 working copy of the feature tile if it is stored
    # sub-32-bit in HBM (the in-kernel astype may materialize).
    row_bytes = 2 * (lanes_f * isf + lanes_w * isw)
    if isf < 4:
        row_bytes += lanes_f * 4

    input_budget, vmem_limit = _vmem_budgets()
    max_rows = max(64, input_budget // row_bytes)     # cap on b_tile * tg_tile

    # ---- T tile (reduction axis, last grid dim) ---------------------------
    # Target ~1024 timesteps per step, balanced over the number of T tiles to
    # minimize zero padding.
    tg_cap = max(8, min(_round_up(Tg, 8), _round_up(max(1, 1024 // g), 8)))
    n_t = pl.cdiv(Tg, tg_cap)
    tg_tile = _round_up(pl.cdiv(Tg, n_t), 8)

    # ---- B tile (parallel axis) --------------------------------------------
    B8 = _round_up(B, 8)
    b_from_budget = max(8, (max_rows // tg_tile) // 8 * 8)
    # Keep >= 2 programs on the parallel axis when the batch allows, so v7x's
    # two TensorCores both get work (harmless on single-core chips).
    b_cap = B8 if B8 < 16 else _round_up(pl.cdiv(B8, 2), 8)
    b_cap = min(b_cap, b_from_budget)
    n_b = pl.cdiv(B8, b_cap)
    b_tile = _round_up(pl.cdiv(B8, n_b), 8)

    # If the batch was the binding constraint, spend the leftover budget on a
    # taller T tile (fewer, larger DMAs).
    if b_tile * tg_tile < max_rows and Tg > tg_tile:
        tg_cap2 = max(tg_tile, (max_rows // b_tile) // 8 * 8)
        n_t = max(1, pl.cdiv(Tg, tg_cap2))
        tg_tile = _round_up(pl.cdiv(Tg, n_t), 8)

    B_pad = _round_up(B, b_tile)
    Tg_pad = _round_up(Tg, tg_tile)
    T_pad = Tg_pad * g

    # ---- pad (zeros on T contribute nothing; padded batch rows get w=1.0
    #      so the discarded output rows stay finite) -------------------------
    f_p, w_p = features, weight
    if (B_pad, T_pad) != (B, T):
        f_p = jnp.pad(features, ((0, B_pad - B), (0, T_pad - T), (0, 0)))
        w_p = jnp.pad(weight, ((0, 0), (0, T_pad - T)))
        if B_pad != B:
            w_p = jnp.pad(w_p, ((0, B_pad - B), (0, 0)), constant_values=1.0)

    # Free row-major reshapes: lane-pack g consecutive timesteps.
    f_p = f_p.reshape(B_pad, Tg_pad, Dp)
    w_p = w_p.reshape(B_pad, Tg_pad, g)

    grid = (B_pad // b_tile, Tg_pad // tg_tile)
    kernel = functools.partial(_ndvi_w2v_kernel, D=D, g=g)

    cost = pl.CostEstimate(
        flops=2 * B_pad * T_pad * D,
        transcendentals=0,
        bytes_accessed=isf * B_pad * T_pad * D + isw * B_pad * T_pad + iso * B_pad * D,
    )

    out = pl.pallas_call(
        kernel,
        out_shape=jax.ShapeDtypeStruct((B_pad, D), out_dtype),
        grid_spec=pltpu.PrefetchScalarGridSpec(
            num_scalar_prefetch=0,
            grid=grid,
            in_specs=[
                pl.BlockSpec((b_tile, tg_tile, g), lambda i, k: (i, k, 0)),    # weight
                pl.BlockSpec((b_tile, tg_tile, Dp), lambda i, k: (i, k, 0)),   # features
            ],
            out_specs=pl.BlockSpec((b_tile, D), lambda i, k: (i, 0)),
            scratch_shapes=[
                pltpu.VMEM((b_tile, Dp), jnp.float32),   # lane-packed Σ_t w·f
                pltpu.VMEM((b_tile, 1), jnp.float32),    # Σ_t w
            ],
        ),
        compiler_params=pltpu.CompilerParams(
            dimension_semantics=("parallel", "arbitrary"),
            vmem_limit_bytes=vmem_limit,
        ),
        cost_estimate=cost,
    )(w_p, f_p)

    out = out[:B]                      # drop padded batch rows
    # Match torch's .squeeze(): drop any size-1 dims (B==1 -> (D,), D==1 -> (B,)).
    return jnp.squeeze(out)


if __name__ == "__main__":
    key = jax.random.PRNGKey(0)
    k1, k2, k3, k4 = jax.random.split(key, 4)

    # --- shape implied by the module: batch=2, seq=8, hidden=32 -------------
    B, T, D = 2, 8, 32
    features = jax.random.normal(k1, (B, T, D), dtype=jnp.float32)
    weight = jax.random.uniform(k2, (B, T), dtype=jnp.float32, minval=0.1, maxval=1.0)

    out = jax.block_until_ready(ndvi_w2v_bottleneck(features, weight))
    w_norm = weight / jnp.sum(weight, axis=1, keepdims=True)
    ref = jnp.einsum("bt,btd->bd", w_norm, features)
    assert out.shape == (B, D)
    assert jnp.allclose(out, ref, atol=1e-5, rtol=1e-5)

    # --- a shape that exercises lane packing, T/B padding and 2 B-programs ---
    B2, T2, D2 = 10, 300, 32
    features2 = jax.random.normal(k3, (B2, T2, D2), dtype=jnp.float32)
    weight2 = jax.random.uniform(k4, (B2, T2), dtype=jnp.float32, minval=0.1, maxval=1.0)
    out2 = jax.block_until_ready(ndvi_w2v_bottleneck(features2, weight2))
    w2 = weight2 / jnp.sum(weight2, axis=1, keepdims=True)
    ref2 = jnp.einsum("bt,btd->bd", w2, features2)
    assert out2.shape == (B2, D2)
    assert jnp.allclose(out2, ref2, atol=1e-4, rtol=1e-4)

    print("KERNEL_OK")
</pallas_src>

<mosaic_0001>
module attributes {stable_mosaic.version = 11 : i64} {
  func.func @_ndvi_w2v_kernel(%arg0: i32, %arg1: i32, %arg2: memref<8x8x4xf32, #tpu.memory_space<vmem>>, %arg3: memref<8x8x128xf32, #tpu.memory_space<vmem>>, %arg4: memref<8x32xf32, #tpu.memory_space<vmem>>, %arg5: memref<8x128xf32, #tpu.memory_space<vmem>>, %arg6: memref<8x1xf32, #tpu.memory_space<vmem>>) attributes {dimension_semantics = [#tpu.dimension_semantics<parallel>, #tpu.dimension_semantics<arbitrary>], iteration_bounds = array<i64: 1, 1>, scalar_prefetch = 0 : i64, scratch_operands = 2 : i64, tpu.core_type = #tpu.core_type<tc>, window_params = [{transform_indices = @transform_0, window_bounds = array<i64: 8, 8, 4>}, {transform_indices = @transform_1, window_bounds = array<i64: 8, 8, 128>}, {transform_indices = @transform_2, window_bounds = array<i64: 8, 32>}]} {
    %c0_i32 = arith.constant 0 : i32
    %0 = arith.cmpi eq, %arg1, %c0_i32 : i32
    %1 = arith.extui %0 : i1 to i32
    %c0_i32_0 = arith.constant 0 : i32
    %2 = arith.cmpi ne, %1, %c0_i32_0 : i32
    scf.if %2 {
      %cst_30 = arith.constant 0.000000e+00 : f32
      %46 = vector.broadcast %cst_30 : f32 to vector<8x128xf32>
      %c0_31 = arith.constant 0 : index
      %c0_32 = arith.constant 0 : index
      %47 = vector.load %arg5[%c0_31, %c0_32] : memref<8x128xf32, #tpu.memory_space<vmem>>, vector<8x128xf32>
      tpu.vector_store %arg5[%c0_31, %c0_32], %46 {strides = array<i32>} : memref<8x128xf32, #tpu.memory_space<vmem>>, vector<8x128xf32>,
      %cst_33 = arith.constant 0.000000e+00 : f32
      %48 = vector.broadcast %cst_33 : f32 to vector<8x1xf32>
      %c0_34 = arith.constant 0 : index
      %c0_35 = arith.constant 0 : index
      %49 = vector.load %arg6[%c0_34, %c0_35] : memref<8x1xf32, #tpu.memory_space<vmem>>, vector<8x1xf32>
      tpu.vector_store %arg6[%c0_34, %c0_35], %48 {strides = array<i32>} : memref<8x1xf32, #tpu.memory_space<vmem>>, vector<8x1xf32>,
    } else {
    }
    %c0 = arith.constant 0 : index
    %c0_1 = arith.constant 0 : index
    %c0_2 = arith.constant 0 : index
    %3 = vector.load %arg3[%c0, %c0_1, %c0_2] : memref<8x8x128xf32, #tpu.memory_space<vmem>>, vector<8x8x128xf32>
    %c0_3 = arith.constant 0 : index
    %c0_4 = arith.constant 0 : index
    %c0_5 = arith.constant 0 : index
    %4 = vector.load %arg2[%c0_3, %c0_4, %c0_5] : memref<8x8x4xf32, #tpu.memory_space<vmem>>, vector<8x8x4xf32>
    %5 = vector.extract_strided_slice %4 {offsets = [0, 0, 0], sizes = [8, 8, 1], strides = [1, 1, 1]} : vector<8x8x4xf32> to vector<8x8x1xf32>
    %6 = vector.extract_strided_slice %3 {offsets = [0, 0, 0], sizes = [8, 8, 32], strides = [1, 1, 1]} : vector<8x8x128xf32> to vector<8x8x32xf32>
    %c0_6 = arith.constant 0 : index
    %c0_7 = arith.constant 0 : index
    %7 = vector.load %arg5[%c0_6, %c0_7] : memref<8x128xf32, #tpu.memory_space<vmem>>, vector<8x32xf32>
    %8 = vector.broadcast %5 : vector<8x8x1xf32> to vector<8x8x32xf32>
    %9 = arith.mulf %8, %6 : vector<8x8x32xf32>
    %cst = arith.constant dense<0.000000e+00> : vector<8x32xf32>
    %10 = vector.multi_reduction <add>, %9, %cst [1] : vector<8x8x32xf32> to vector<8x32xf32>
    %11 = arith.addf %7, %10 : vector<8x32xf32>
    %c0_8 = arith.constant 0 : index
    %c0_9 = arith.constant 0 : index
    %12 = vector.load %arg5[%c0_8, %c0_9] : memref<8x128xf32, #tpu.memory_space<vmem>>, vector<8x32xf32>
    tpu.vector_store %arg5[%c0_8, %c0_9], %11 {strides = array<i32>} : memref<8x128xf32, #tpu.memory_space<vmem>>, vector<8x32xf32>,
    %13 = vector.extract_strided_slice %4 {offsets = [0, 0, 1], sizes = [8, 8, 1], strides = [1, 1, 1]} : vector<8x8x4xf32> to vector<8x8x1xf32>
    %14 = vector.extract_strided_slice %3 {offsets = [0, 0, 32], sizes = [8, 8, 32], strides = [1, 1, 1]} : vector<8x8x128xf32> to vector<8x8x32xf32>
    %c0_10 = arith.constant 0 : index
    %c32 = arith.constant 32 : index
    %15 = vector.load %arg5[%c0_10, %c32] : memref<8x128xf32, #tpu.memory_space<vmem>>, vector<8x32xf32>
    %16 = vector.broadcast %13 : vector<8x8x1xf32> to vector<8x8x32xf32>
    %17 = arith.mulf %16, %14 : vector<8x8x32xf32>
    %cst_11 = arith.constant dense<0.000000e+00> : vector<8x32xf32>
    %18 = vector.multi_reduction <add>, %17, %cst_11 [1] : vector<8x8x32xf32> to vector<8x32xf32>
    %19 = arith.addf %15, %18 : vector<8x32xf32>
    %c0_12 = arith.constant 0 : index
    %c32_13 = arith.constant 32 : index
    %20 = vector.load %arg5[%c0_12, %c32_13] : memref<8x128xf32, #tpu.memory_space<vmem>>, vector<8x32xf32>
    tpu.vector_store %arg5[%c0_12, %c32_13], %19 {strides = array<i32>} : memref<8x128xf32, #tpu.memory_space<vmem>>, vector<8x32xf32>,
    %21 = vector.extract_strided_slice %4 {offsets = [0, 0, 2], sizes = [8, 8, 1], strides = [1, 1, 1]} : vector<8x8x4xf32> to vector<8x8x1xf32>
    %22 = vector.extract_strided_slice %3 {offsets = [0, 0, 64], sizes = [8, 8, 32], strides = [1, 1, 1]} : vector<8x8x128xf32> to vector<8x8x32xf32>
    %c0_14 = arith.constant 0 : index
    %c64 = arith.constant 64 : index
    %23 = vector.load %arg5[%c0_14, %c64] : memref<8x128xf32, #tpu.memory_space<vmem>>, vector<8x32xf32>
    %24 = vector.broadcast %21 : vector<8x8x1xf32> to vector<8x8x32xf32>
    %25 = arith.mulf %24, %22 : vector<8x8x32xf32>
    %cst_15 = arith.constant dense<0.000000e+00> : vector<8x32xf32>
    %26 = vector.multi_reduction <add>, %25, %cst_15 [1] : vector<8x8x32xf32> to vector<8x32xf32>
    %27 = arith.addf %23, %26 : vector<8x32xf32>
    %c0_16 = arith.constant 0 : index
    %c64_17 = arith.constant 64 : index
    %28 = vector.load %arg5[%c0_16, %c64_17] : memref<8x128xf32, #tpu.memory_space<vmem>>, vector<8x32xf32>
    tpu.vector_store %arg5[%c0_16, %c64_17], %27 {strides = array<i32>} : memref<8x128xf32, #tpu.memory_space<vmem>>, vector<8x32xf32>,
    %29 = vector.extract_strided_slice %4 {offsets = [0, 0, 3], sizes = [8, 8, 1], strides = [1, 1, 1]} : vector<8x8x4xf32> to vector<8x8x1xf32>
    %30 = vector.extract_strided_slice %3 {offsets = [0, 0, 96], sizes = [8, 8, 32], strides = [1, 1, 1]} : vector<8x8x128xf32> to vector<8x8x32xf32>
    %c0_18 = arith.constant 0 : index
    %c96 = arith.constant 96 : index
    %31 = vector.load %arg5[%c0_18, %c96] : memref<8x128xf32, #tpu.memory_space<vmem>>, vector<8x32xf32>
    %32 = vector.broadcast %29 : vector<8x8x1xf32> to vector<8x8x32xf32>
    %33 = arith.mulf %32, %30 : vector<8x8x32xf32>
    %cst_19 = arith.constant dense<0.000000e+00> : vector<8x32xf32>
    %34 = vector.multi_reduction <add>, %33, %cst_19 [1] : vector<8x8x32xf32> to vector<8x32xf32>
    %35 = arith.addf %31, %34 : vector<8x32xf32>
    %c0_20 = arith.constant 0 : index
    %c96_21 = arith.constant 96 : index
    %36 = vector.load %arg5[%c0_20, %c96_21] : memref<8x128xf32, #tpu.memory_space<vmem>>, vector<8x32xf32>
    tpu.vector_store %arg5[%c0_20, %c96_21], %35 {strides = array<i32>} : memref<8x128xf32, #tpu.memory_space<vmem>>, vector<8x32xf32>,
    %c0_22 = arith.constant 0 : index
    %c0_23 = arith.constant 0 : index
    %37 = vector.load %arg6[%c0_22, %c0_23] : memref<8x1xf32, #tpu.memory_space<vmem>>, vector<8x1xf32>
    %cst_24 = arith.constant dense<0.000000e+00> : vector<8x8xf32>
    %38 = vector.multi_reduction <add>, %4, %cst_24 [2] : vector<8x8x4xf32> to vector<8x8xf32>
    %39 = vector.shape_cast %38 : vector<8x8xf32> to vector<8x8x1xf32>
    %cst_25 = arith.constant dense<0.000000e+00> : vector<8x1xf32>
    %40 = vector.multi_reduction <add>, %39, %cst_25 [1] : vector<8x8x1xf32> to vector<8x1xf32>
    %41 = arith.addf %37, %40 : vector<8x1xf32>
    %c0_26 = arith.constant 0 : index
    %c0_27 = arith.constant 0 : index
    %42 = vector.load %arg6[%c0_26, %c0_27] : memref<8x1xf32, #tpu.memory_space<vmem>>, vector<8x1xf32>
    tpu.vector_store %arg6[%c0_26, %c0_27], %41 {strides = array<i32>} : memref<8x1xf32, #tpu.memory_space<vmem>>, vector<8x1xf32>,
    %c0_i32_28 = arith.constant 0 : i32
    %43 = arith.cmpi eq, %arg1, %c0_i32_28 : i32
    %44 = arith.extui %43 : i1 to i32
    %c0_i32_29 = arith.constant 0 : i32
    %45 = arith.cmpi ne, %44, %c0_i32_29 : i32
    scf.if %45 {
      %c0_30 = arith.constant 0 : index
      %c0_31 = arith.constant 0 : index
      %46 = vector.load %arg5[%c0_30, %c0_31] : memref<8x128xf32, #tpu.memory_space<vmem>>, vector<8x32xf32>
      %c0_32 = arith.constant 0 : index
      %c32_33 = arith.constant 32 : index
      %47 = vector.load %arg5[%c0_32, %c32_33] : memref<8x128xf32, #tpu.memory_space<vmem>>, vector<8x32xf32>
      %48 = arith.addf %46, %47 : vector<8x32xf32>
      %c0_34 = arith.constant 0 : index
      %c64_35 = arith.constant 64 : index
      %49 = vector.load %arg5[%c0_34, %c64_35] : memref<8x128xf32, #tpu.memory_space<vmem>>, vector<8x32xf32>
      %50 = arith.addf %48, %49 : vector<8x32xf32>
      %c0_36 = arith.constant 0 : index
      %c96_37 = arith.constant 96 : index
      %51 = vector.load %arg5[%c0_36, %c96_37] : memref<8x128xf32, #tpu.memory_space<vmem>>, vector<8x32xf32>
      %52 = arith.addf %50, %51 : vector<8x32xf32>
      %c0_38 = arith.constant 0 : index
      %c0_39 = arith.constant 0 : index
      %53 = vector.load %arg6[%c0_38, %c0_39] : memref<8x1xf32, #tpu.memory_space<vmem>>, vector<8x1xf32>
      %54 = tpu.reciprocal %53 : vector<8x1xf32> -> vector<8x1xf32>
      %55 = vector.broadcast %54 : vector<8x1xf32> to vector<8x32xf32>
      %56 = arith.mulf %52, %55 : vector<8x32xf32>
      %c0_40 = arith.constant 0 : index
      %c0_41 = arith.constant 0 : index
      %57 = vector.load %arg4[%c0_40, %c0_41] : memref<8x32xf32, #tpu.memory_space<vmem>>, vector<8x32xf32>
      tpu.vector_store %arg4[%c0_40, %c0_41], %56 {strides = array<i32>} : memref<8x32xf32, #tpu.memory_space<vmem>>, vector<8x32xf32>,
    } else {
    }
    return
  }
  func.func @transform_0(%arg0: i32, %arg1: i32) -> (i32, i32, i32) {
    %c0_i32 = arith.constant 0 : i32
    %c0_i32_0 = arith.constant 0 : i32
    return %arg0, %arg1, %c0_i32 : i32, i32, i32
  }
  func.func @transform_1(%arg0: i32, %arg1: i32) -> (i32, i32, i32) {
    %c0_i32 = arith.constant 0 : i32
    %c0_i32_0 = arith.constant 0 : i32
    return %arg0, %arg1, %c0_i32 : i32, i32, i32
  }
  func.func @transform_2(%arg0: i32, %arg1: i32) -> (i32, i32) {
    %c0_i32 = arith.constant 0 : i32
    %c0_i32_0 = arith.constant 0 : i32
    return %arg0, %c0_i32 : i32, i32
  }
}

</mosaic_0001>

<bundles_post_ra>
// kernel: tpu_custom_call.1
= control target key start
LH: loop header
LB: loop body
LE: loop exit
PB: predicated region body
PF: predicated region fallthrough
CT: control target
= control target key end

     0   :  { %v713_v3 = vmov 0   ;;  %s988_s0 = inlined_call_operand.vmem [shape: f32[8,8,4], index: 0, kind: input, shape index: {}]   ;;  %s989_s1 = inlined_call_operand.vmem [shape: f32[8,8,128], index: 1, kind: input, shape index: {}]   ;;  %s990_s2 = inlined_call_operand.hbm [shape: f32[8,32], index: 2, kind: output, shape index: {}]  }
   0x1   :  { %v740_v0 = vld [vmem:[%s988_s0 + $0x20] sm:$0xff]  ;;  %v745_v1 = vld [vmem:[%s988_s0 + $0x10] sm:$0xff]  ;;  %673 = vset.pattern.permute.xlu2 %v713_v3  ;;  %672 = vset.pattern.permute.xlu1 %v713_v3 }
   0x2   :  { %v750_v2 = vld [vmem:[%s988_s0] sm:$0xff]  ;;  %671 = vset.pattern.permute.xlu0 %v713_v3  ;;  %58 = vperm.xlu2 %673, %v740_v0  }
   0x3   :  { %7 = vsyncpa [#allocation5], 0  ;;  %48 = vperm.xlu1 %672, %v745_v1   ;;  %38 = vperm.xlu0 %671, %v750_v2   ;;  %v761_v4 = vld [vmem:[%s988_s0 + $0x28] sm:$0xff]  ;;  %v766_v5 = vld [vmem:[%s988_s0 + $0x18] sm:$0xff]  ;;  %v714_v9 = vmov 1   ;;  %v715_v10 = vmov 2  }
   0x4   :  { %v771_v6 = vld [vmem:[%s988_s0 + $0x8] sm:$0xff]  ;;  %v779_v7 = vld [vmem:[%s988_s0 + $0x38] sm:$0xff]  ;;  %v784_v8 = vld [vmem:[%s988_s0 + $0x30] sm:$0xff]  ;;  %vm515_vm0 = vcmask 31744   ;;  %vm84_vm1 = vcmask 261120   ;;  %v716_v26 = vmov 0.0  }
   0x5   :  { %v519_v11 = vsel %vm515_vm0, %v771_v6, 0.0  ;;  %v522_v12 = vsel %vm515_vm0, %v745_v1, 0.0  ;;  %v516_v13 = vsel %vm515_vm0, %v750_v2, 0.0  ;;  %v525_v14 = vsel %vm515_vm0, %v766_v5, 0.0  ;;  %v811_v17 = vld [vmem:[%s989_s1 + $0x20] sm:$0xff]  ;;  %v820_v21 = vld [vmem:[%s989_s1 + $0x28] sm:$0xff] }
   0x6   :  { %v528_v16 = vsel %vm515_vm0, %v740_v0, 0.0  ;;  %v827_v24 = vld [vmem:[%s989_s1 + $0x10] sm:$0xff]  ;;  %16 = vst [vmem:[#allocation2] sm:$0xff] %v716_v26  ;;  %v833_v27 = vld [vmem:[%s989_s1] sm:$0xff]  ;;  %v844_v41 = vld [vmem:[%s989_s1 + $0x8] sm:$0xff]  ;;  %vm207_vm2 = vcmask 523520  }
   0x7   :  { %v849_v44 = vld [vmem:[%s989_s1 + $0x18] sm:$0xff]  ;;  %vm149_vm3 = vcmask 1041409   ;;  %vm151_vm4 = vcmask 1042434   ;;  %vm153_vm5 = vcmask 1043459   ;;  %vm155_vm6 = vcmask 1044484   ;;  %s719_s12 = smov 64  }
   0x8   :  { %v860_v63 = vld [vmem:[%s989_s1 + $0x38] sm:$0xff]  ;;  %vm157_vm7 = vcmask 1045509   ;;  %vm159_vm8 = vcmask 1046534   ;;  %vm161_vm9 = vcmask 1047559   ;;  %vm323_vm10 = vcmask 785920   ;;  %s720_s13 = smov 96  }
   0x9   :  { %vm17_vm11 = vcmask 7168   ;;  %vm439_vm12 = vcmask 1048320   ;;  %s721_s14 = smov [#allocation4]   ;;  %s653_s18 = sshll.u32 %s990_s2, 4  ;;  %s654_s18 = int_to_ptr.hbm [resolvable:$true] %s653_s18 }
   0xa   :  { %63 = vperm.xlu2 %673, %v761_v4   ;;  %18 = vst.msk [vmem:[#allocation3] sm:$0xff] %vm17_vm11, %v716_v26  ;;  %s651_s15 = sshll.u32 %s721_s14, 4  ;;  %s652_s15 = int_to_ptr.vmem [resolvable:$true] %s651_s15 }
   0xb   :  { %53 = vperm.xlu1 %672, %v766_v5   ;;  %43 = vperm.xlu0 %671, %v771_v6  }
  0x12   :  { %674 = vset.pattern.permute.xlu2 %v714_v9 }
  0x13   :  { %73 = vperm.xlu1 %672, %v779_v7   ;;  %68 = vperm.xlu0 %671, %v784_v8  }
  0x14   :  { %168 = vperm.xlu2 %674, %v750_v2  }
  0x1b   :  { %676 = vset.pattern.permute.xlu1 %v714_v9  ;;  %675 = vset.pattern.permute.xlu0 %v714_v9  ;;  %v865_v9 = vld [vmem:[%s989_s1 + $0x30] sm:$0xff]  ;;  %s718_s1 = smov 32  }
  0x1c   :  { %176 = vperm.xlu1 %676, %v745_v1   ;;  %180 = vperm.xlu2 %674, %v766_v5  }
  0x1d   :  { %172 = vperm.xlu0 %675, %v771_v6  }
  0x24   :  { %184 = vperm.xlu1 %676, %v740_v0   ;;  %188 = vperm.xlu2 %674, %v761_v4  }
  0x25   :  { %192 = vperm.xlu0 %675, %v784_v8  }
  0x2c   :  { %196 = vperm.xlu1 %676, %v779_v7   ;;  %677 = vset.pattern.permute.xlu2 %v715_v10 }
  0x2d   :  { %678 = vset.pattern.permute.xlu0 %v715_v10 }
  0x34   :  { %679 = vset.pattern.permute.xlu1 %v715_v10 }
  0x4d   :  { %520 = vadd.xlane.f32.xlu2 %v519_v11 }
  0x4f   :  { %523 = vadd.xlane.f32.xlu0 %v522_v12 }
  0x56   :  { %517 = vadd.xlane.f32.xlu1 %v516_v13 }
  0x5c   :  { %v59_v15 = vpop.permute.xlu2 %58 }
  0x5d   :  { %v80_v19 = vmul.f32 %v59_v15, %v811_v17 }
  0x5e   :  { %526 = vadd.xlane.f32.xlu1 %v525_v14 }
  0x5f   :  { %v113_v20 = vsel %vm84_vm1, %v80_v19, 0.0 }
  0x60   :  { %v114_v22 = vrot.slane %v113_v20, 4 }
  0x62   :  { %v115_v30 = vadd.f32 %v114_v22, %v113_v20 }
  0x63   :  { %288 = vperm.xlu0 %678, %v771_v6  }
  0x64   :  { %v64_v18 = vpop.permute.xlu2 %63  ;;  %v116_v38 = vrot.slane %v115_v30, 2 }
  0x65   :  { %284 = vperm.xlu2 %677, %v750_v2   ;;  %v81_v23 = vmul.f32 %v64_v18, %v820_v21 }
  0x66   :  { %529 = vadd.xlane.f32.xlu1 %v528_v16  ;;  %v117_v47 = vadd.f32 %v116_v38, %v115_v30 }
  0x67   :  { %v120_v33 = vsel %vm84_vm1, %v81_v23, 0.0 }
  0x68   :  { %v121_v39 = vrot.slane %v120_v33, 4  ;;  %v118_v58 = vrot.slane %v117_v47, 1 }
  0x6a   :  { %v122_v48 = vadd.f32 %v121_v39, %v120_v33  ;;  %v119_v16 = vadd.f32 %v118_v58, %v117_v47 }
  0x6b   :  { %304 = vperm.xlu0 %678, %v761_v4  }
  0x6c   :  { %v123_v59 = vrot.slane %v122_v48, 2 }
  0x6d   :  { %296 = vperm.xlu2 %677, %v766_v5  }
  0x6e   :  { %v169_v25 = vpop.permute.xlu2 %168  ;;  %v124_v18 = vadd.f32 %v123_v59, %v122_v48 }
  0x6f   :  { %v199_v60 = vmul.f32 %v169_v25, %v833_v27 }
  0x70   :  { %v125_v38 = vrot.slane %v124_v18, 1 }
  0x71   :  { %v208_v22 = vsel %vm207_vm2, %v199_v60, 0.0 }
  0x72   :  { %v209_v39 = vrot.slane %v208_v22, 4 }
  0x73   :  { %312 = vperm.xlu0 %678, %v779_v7  }
  0x75   :  { %v49_v28 = vpop.permute.xlu1 %48  ;;  %300 = vperm.xlu2 %677, %v740_v0   ;;  %v39_v29 = vpop.permute.xlu0 %38 }
  0x76   :  { %v78_v31 = vmul.f32 %v49_v28, %v827_v24  ;;  %v76_v32 = vmul.f32 %v39_v29, %v833_v27  ;;  %v181_v51 = vpop.permute.xlu2 %180 }
  0x77   :  { %v202_v23 = vmul.f32 %v181_v51, %v849_v44 }
  0x78   :  { %v99_v34 = vsel %vm84_vm1, %v78_v31, 0.0  ;;  %v85_v35 = vsel %vm84_vm1, %v76_v32, 0.0 }
  0x79   :  { %v100_v36 = vrot.slane %v99_v34, 4  ;;  %v86_v37 = vrot.slane %v85_v35, 4 }
  0x7b   :  { %v87_v40 = vadd.f32 %v86_v37, %v85_v35  ;;  %v101_v42 = vadd.f32 %v100_v36, %v99_v34 }
  0x7d   :  { %v88_v43 = vrot.slane %v87_v40, 2  ;;  %v54_v45 = vpop.permute.xlu1 %53  ;;  %v44_v46 = vpop.permute.xlu0 %43  ;;  %v102_v52 = vrot.slane %v101_v42, 2 }
  0x7e   :  { %v79_v49 = vmul.f32 %v54_v45, %v849_v44  ;;  %v77_v50 = vmul.f32 %v44_v46, %v844_v41  ;;  %v189_v35 = vpop.permute.xlu2 %188  ;;  %v229_v46 = vsel %vm207_vm2, %v202_v23, 0.0 }
  0x7f   :  { %292 = vperm.xlu1 %679, %v745_v1   ;;  %v89_v53 = vadd.f32 %v88_v43, %v87_v40  ;;  %v103_v10 = vadd.f32 %v102_v52, %v101_v42  ;;  %v204_v47 = vmul.f32 %v189_v35, %v820_v21  ;;  %v126_v52 = vadd.f32 %v125_v38, %v124_v18 }
  0x80   :  { %v106_v54 = vsel %vm84_vm1, %v79_v49, 0.0  ;;  %v92_v55 = vsel %vm84_vm1, %v77_v50, 0.0 }
  0x81   :  { %v107_v56 = vrot.slane %v106_v54, 4  ;;  %v93_v57 = vrot.slane %v92_v55, 4  ;;  %v90_v11 = vrot.slane %v89_v53, 1  ;;  %v104_v29 = vrot.slane %v103_v10, 1 }
  0x83   :  { %v108_v61 = vadd.f32 %v107_v56, %v106_v54  ;;  %v94_v62 = vadd.f32 %v93_v57, %v92_v55  ;;  %v91_v30 = vadd.f32 %v90_v11, %v89_v53  ;;  %v105_v45 = vadd.f32 %v104_v29, %v103_v10 }
  0x84   :  { %v210_v53 = vadd.f32 %v209_v39, %v208_v22 }
  0x85   :  { %v109_v12 = vrot.slane %v108_v61, 2  ;;  %v95_v13 = vrot.slane %v94_v62, 2  ;;  %v74_v14 = vpop.permute.xlu1 %73  ;;  %v69_v15 = vpop.permute.xlu0 %68 }
  0x86   :  { %v83_v19 = vmul.f32 %v74_v14, %v860_v63  ;;  %v82_v20 = vmul.f32 %v69_v15, %v865_v9  ;;  %v717_v15 = vmov 3   ;;  %v211_v18 = vrot.slane %v210_v53, 2 }
  0x87   :  { %v110_v25 = vadd.f32 %v109_v12, %v108_v61  ;;  %v96_v28 = vadd.f32 %v95_v13, %v94_v62  ;;  %308 = vperm.xlu1 %679, %v784_v8   ;;  %v230_v61 = vrot.slane %v229_v46, 4  ;;  %v243_v62 = vsel %vm207_vm2, %v204_v47, 0.0  ;;  %681 = vset.pattern.permute.xlu0 %v717_v15 }
  0x88   :  { %v134_v31 = vsel %vm84_vm1, %v83_v19, 0.0  ;;  %v127_v32 = vsel %vm84_vm1, %v82_v20, 0.0  ;;  %680 = vset.pattern.permute.xlu2 %v717_v15  ;;  %v244_v29 = vrot.slane %v243_v62, 4 }
  0x89   :  { %v111_v33 = vrot.slane %v110_v25, 1  ;;  %v97_v34 = vrot.slane %v96_v28, 1  ;;  %v135_v36 = vrot.slane %v134_v31, 4  ;;  %v128_v37 = vrot.slane %v127_v32, 4 }
  0x8b   :  { %v98_v40 = vadd.f32 %v97_v34, %v96_v28  ;;  %v136_v42 = vadd.f32 %v135_v36, %v134_v31  ;;  %v129_v43 = vadd.f32 %v128_v37, %v127_v32  ;;  %v112_v48 = vadd.f32 %v111_v33, %v110_v25 }
  0x8c   :  { %v231_v28 = vadd.f32 %v230_v61, %v229_v46  ;;  %v212_v33 = vadd.f32 %v211_v18, %v210_v53 }
  0x8d   :  { %v150_v49 = vsel %vm149_vm3, %v98_v40, %v91_v30  ;;  %v137_v50 = vrot.slane %v136_v42, 2  ;;  %v130_v51 = vrot.slane %v129_v43, 2 }
  0x8e   :  { %v152_v54 = vsel %vm151_vm4, %v105_v45, %v150_v49  ;;  %v177_v55 = vpop.permute.xlu1 %176  ;;  %v232_v40 = vrot.slane %v231_v28, 2 }
  0x8f   :  { %v154_v56 = vsel %vm153_vm5, %v112_v48, %v152_v54  ;;  %v138_v57 = vadd.f32 %v137_v50, %v136_v42  ;;  %v131_v58 = vadd.f32 %v130_v51, %v129_v43  ;;  %v201_v59 = vmul.f32 %v177_v55, %v827_v24  ;;  %v173_v60 = vpop.permute.xlu0 %172  ;;  %682 = vset.pattern.permute.xlu1 %v717_v15 }
  0x90   :  { %v200_v10 = vmul.f32 %v173_v60, %v844_v41  ;;  %v156_v13 = vsel %vm155_vm6, %v119_v16, %v154_v56  ;;  %v245_v42 = vadd.f32 %v244_v29, %v243_v62  ;;  %v213_v48 = vrot.slane %v212_v33, 1 }
  0x91   :  { %v139_v11 = vrot.slane %v138_v57, 1  ;;  %v132_v12 = vrot.slane %v131_v58, 1  ;;  %v222_v14 = vsel %vm207_vm2, %v201_v59, 0.0  ;;  %v158_v30 = vsel %vm157_vm7, %v126_v52, %v156_v13 }
  0x92   :  { %v223_v19 = vrot.slane %v222_v14, 4  ;;  %v215_v20 = vsel %vm207_vm2, %v200_v10, 0.0  ;;  %v534_v51 = vsel %vm515_vm0, %v784_v8, 0.0  ;;  %v531_v55 = vsel %vm515_vm0, %v761_v4, 0.0 }
  0x93   :  { %v140_v22 = vadd.f32 %v139_v11, %v138_v57  ;;  %v133_v23 = vadd.f32 %v132_v12, %v131_v58  ;;  %v216_v25 = vrot.slane %v215_v20, 4  ;;  %v233_v56 = vadd.f32 %v232_v40, %v231_v28 }
  0x94   :  { %v224_v16 = vadd.f32 %v223_v19, %v222_v14  ;;  %v246_v57 = vrot.slane %v245_v42, 2  ;;  %v214_v61 = vadd.f32 %v213_v48, %v212_v33 }
  0x95   :  { %v160_v31 = vsel %vm159_vm8, %v133_v23, %v158_v30  ;;  %v217_v32 = vadd.f32 %v216_v25, %v215_v20  ;;  %v234_v14 = vrot.slane %v233_v56, 1 }
  0x96   :  { %v162_v34 = vsel %vm161_vm9, %v140_v22, %v160_v31  ;;  %v225_v35 = vrot.slane %v224_v16, 2  ;;  %v185_v36 = vpop.permute.xlu1 %184  ;;  %v247_v15 = vadd.f32 %v246_v57, %v245_v42 }
  0x97   :  { %v218_v37 = vrot.slane %v217_v32, 2  ;;  %v203_v38 = vmul.f32 %v185_v36, %v811_v17  ;;  %v193_v39 = vpop.permute.xlu0 %192  ;;  %165 = vst.msk [vmem:[#allocation2] sm:$0xff] %vm84_vm1, %v162_v34  ;;  %v235_v29 = vadd.f32 %v234_v14, %v233_v56 }
  0x98   :  { %v226_v43 = vadd.f32 %v225_v35, %v224_v16  ;;  %v205_v45 = vmul.f32 %v193_v39, %v865_v9  ;;  %v248_v30 = vrot.slane %v247_v15, 1 }
  0x99   :  { %v219_v46 = vadd.f32 %v218_v37, %v217_v32  ;;  %v236_v47 = vsel %vm207_vm2, %v203_v38, 0.0 }
  0x9a   :  { %v237_v49 = vrot.slane %v236_v47, 4  ;;  %v250_v50 = vsel %vm207_vm2, %v205_v45, 0.0  ;;  %v227_v52 = vrot.slane %v226_v43, 1  ;;  %v249_v36 = vadd.f32 %v248_v30, %v247_v15 }
  0x9b   :  { %v220_v53 = vrot.slane %v219_v46, 1  ;;  %v251_v54 = vrot.slane %v250_v50, 4 }
  0x9c   :  { %v238_v58 = vadd.f32 %v237_v49, %v236_v47  ;;  %v228_v11 = vadd.f32 %v227_v52, %v226_v43  ;;  %v537_v47 = vsel %vm515_vm0, %v779_v7, 0.0 }
  0x9d   :  { %v221_v59 = vadd.f32 %v220_v53, %v219_v46  ;;  %v252_v60 = vadd.f32 %v251_v54, %v250_v50  ;;  %535 = vadd.xlane.f32.xlu0 %v534_v51 }
  0x9e   :  { %v239_v62 = vrot.slane %v238_v58, 2  ;;  %v197_v10 = vpop.permute.xlu1 %196  ;;  %532 = vadd.xlane.f32.xlu2 %v531_v55  ;;  %v166_v45 = vld [vmem:[#allocation2] sm:$0xff] }
  0x9f   :  { %v253_v12 = vrot.slane %v252_v60, 2  ;;  %v206_v13 = vmul.f32 %v197_v10, %v860_v63  ;;  %v272_v18 = vsel %vm149_vm3, %v221_v59, %v214_v61 }
  0xa0   :  { %v240_v19 = vadd.f32 %v239_v62, %v238_v58  ;;  %v273_v28 = vsel %vm151_vm4, %v228_v11, %v272_v18 }
  0xa1   :  { %v254_v20 = vadd.f32 %v253_v12, %v252_v60  ;;  %v257_v22 = vsel %vm207_vm2, %v206_v13, 0.0  ;;  %v274_v33 = vsel %vm153_vm5, %v235_v29, %v273_v28 }
  0xa2   :  { %v241_v23 = vrot.slane %v240_v19, 1  ;;  %v258_v25 = vrot.slane %v257_v22, 4 }
  0xa3   :  { %v255_v32 = vrot.slane %v254_v20, 1 }
  0xa4   :  { %v242_v16 = vadd.f32 %v241_v23, %v240_v19  ;;  %v259_v31 = vadd.f32 %v258_v25, %v257_v22 }
  0xa5   :  { %v256_v38 = vadd.f32 %v255_v32, %v254_v20 }
  0xa6   :  { %v260_v34 = vrot.slane %v259_v31, 2  ;;  %v275_v35 = vsel %vm155_vm6, %v242_v16, %v274_v33 }
  0xa7   :  { %v276_v39 = vsel %vm157_vm7, %v249_v36, %v275_v35 }
  0xa8   :  { %v261_v37 = vadd.f32 %v260_v34, %v259_v31  ;;  %v277_v43 = vsel %vm159_vm8, %v256_v38, %v276_v39 }
  0xaa   :  { %v262_v40 = vrot.slane %v261_v37, 1 }
  0xac   :  { %v263_v42 = vadd.f32 %v262_v40, %v261_v37 }
  0xae   :  { %v278_v46 = vsel %vm161_vm9, %v263_v42, %v277_v43 }
  0xaf   :  { %v280_v48 = vadd.f32 %v278_v46, %v166_v45 }
  0xb1   :  { %281 = vst.msk [vmem:[#allocation2] sm:$0xff] %vm207_vm2, %v280_v48  ;;  %404 = vperm.xlu0 %681, %v771_v6   ;;  %538 = vadd.xlane.f32.xlu1 %v537_v47 }
  0xb6   :  { %400 = vperm.xlu2 %680, %v750_v2  }
  0xb9   :  { %684 = vset.pattern.permute.xlu0 %v713_v3 }
  0xbe   :  { %412 = vperm.xlu2 %680, %v766_v5  }
  0xc0   :  { %v521_v49 = vpop.xlane.xlu2 %520 }
  0xc1   :  { %v546_v50 = vrot.slane %v521_v49, 4 }
  0xc2   :  { %v524_v51 = vpop.xlane.xlu0 %523 }
  0xc3   :  { %v547_v52 = vadd.f32 %v546_v50, %v521_v49  ;;  %v552_v53 = vrot.slane %v524_v51, 4 }
  0xc5   :  { %v548_v54 = vrot.slane %v547_v52, 2  ;;  %v553_v56 = vadd.f32 %v552_v53, %v524_v51 }
  0xc6   :  { %416 = vperm.xlu2 %680, %v740_v0  }
  0xc7   :  { %v549_v6 = vadd.f32 %v548_v54, %v547_v52  ;;  %v554_v2 = vrot.slane %v553_v56, 2 }
  0xc8   :  { %v285_v61 = vpop.permute.xlu2 %284 }
  0xc9   :  { %v518_v55 = vpop.xlane.xlu1 %517  ;;  %v550_v5 = vrot.slane %v549_v6, 1  ;;  %v555_v62 = vadd.f32 %v554_v2, %v553_v56  ;;  %v315_v16 = vmul.f32 %v285_v61, %v833_v27 }
  0xca   :  { %v540_v57 = vrot.slane %v518_v55, 4  ;;  %408 = vperm.xlu1 %682, %v745_v1  }
  0xcb   :  { %v551_v0 = vadd.f32 %v550_v5, %v549_v6  ;;  %v556_v15 = vrot.slane %v555_v62, 1 }
  0xcc   :  { %v541_v58 = vadd.f32 %v540_v57, %v518_v55 }
  0xcd   :  { %v557_v20 = vadd.f32 %v556_v15, %v555_v62 }
  0xce   :  { %v542_v59 = vrot.slane %v541_v58, 2  ;;  %420 = vperm.xlu2 %680, %v761_v4  }
  0xd0   :  { %v543_v60 = vadd.f32 %v542_v59, %v541_v58  ;;  %v297_v23 = vpop.permute.xlu2 %296 }
  0xd1   :  { %v527_v10 = vpop.xlane.xlu1 %526 }
  0xd2   :  { %v544_v11 = vrot.slane %v543_v60, 1  ;;  %v558_v12 = vrot.slane %v527_v10, 4  ;;  %424 = vperm.xlu1 %682, %v784_v8  }
  0xd4   :  { %v545_v13 = vadd.f32 %v544_v11, %v543_v60  ;;  %v559_v14 = vadd.f32 %v558_v12, %v527_v10 }
  0xd5   :  { %v289_v4 = vpop.permute.xlu0 %288 }
  0xd6   :  { %v596_v1 = vsel %vm149_vm3, %v551_v0, %v545_v13  ;;  %v560_v18 = vrot.slane %v559_v14, 2  ;;  %428 = vperm.xlu2 %680, %v779_v7   ;;  %v316_v30 = vmul.f32 %v289_v4, %v844_v41  ;;  %v318_v7 = vmul.f32 %v297_v23, %v849_v44 }
  0xd7   :  { %v597_v28 = vsel %vm151_vm4, %v557_v20, %v596_v1 }
  0xd8   :  { %v561_v19 = vadd.f32 %v560_v18, %v559_v14  ;;  %v331_v31 = vsel %vm323_vm10, %v316_v30, 0.0  ;;  %v301_v32 = vpop.permute.xlu2 %300  ;;  %v345_v35 = vsel %vm323_vm10, %v318_v7, 0.0 }
  0xd9   :  { %v332_v33 = vrot.slane %v331_v31, 4  ;;  %v319_v34 = vmul.f32 %v301_v32, %v811_v17  ;;  %v931_v36 = vpop.xlane.xlu1 %529  ;;  %v346_v40 = vrot.slane %v345_v35, 4 }
  0xda   :  { %v562_v22 = vrot.slane %v561_v19, 1  ;;  %683 = vset.pattern.permute.xlu1 %v713_v3  ;;  %v324_v3 = vsel %vm323_vm10, %v315_v16, 0.0 }
  0xdb   :  { %v325_v37 = vrot.slane %v324_v3, 4  ;;  %v333_v42 = vadd.f32 %v332_v33, %v331_v31  ;;  %v352_v43 = vsel %vm323_vm10, %v319_v34, 0.0  ;;  %v347_v49 = vadd.f32 %v346_v40, %v345_v35 }
  0xdc   :  { %v563_v25 = vadd.f32 %v562_v22, %v561_v19  ;;  %v353_v47 = vrot.slane %v352_v43, 4 }
  0xdd   :  { %v305_v29 = vpop.permute.xlu0 %304  ;;  %v326_v46 = vadd.f32 %v325_v37, %v324_v3  ;;  %v334_v50 = vrot.slane %v333_v42, 2  ;;  %v348_v57 = vrot.slane %v347_v49, 2 }
  0xde   :  { %v922_v8 = vsel %vm153_vm5, %v563_v25, %v597_v28  ;;  %v320_v39 = vmul.f32 %v305_v29, %v820_v21  ;;  %v354_v56 = vadd.f32 %v353_v47, %v352_v43 }
  0xdf   :  { %v327_v53 = vrot.slane %v326_v46, 2  ;;  %v335_v6 = vadd.f32 %v334_v50, %v333_v42  ;;  %v349_v10 = vadd.f32 %v348_v57, %v347_v49 }
  0xe0   :  { %v359_v48 = vsel %vm323_vm10, %v320_v39, 0.0  ;;  %v355_v61 = vrot.slane %v354_v56, 2 }
  0xe1   :  { %v360_v54 = vrot.slane %v359_v48, 4  ;;  %v328_v5 = vadd.f32 %v327_v53, %v326_v46  ;;  %v336_v11 = vrot.slane %v335_v6, 1  ;;  %v350_v4 = vrot.slane %v349_v10, 1 }
  0xe2   :  { %v356_v18 = vadd.f32 %v355_v61, %v354_v56 }
  0xe3   :  { %v361_v60 = vadd.f32 %v360_v54, %v359_v48  ;;  %v329_v14 = vrot.slane %v328_v5, 1  ;;  %v337_v20 = vadd.f32 %v336_v11, %v335_v6  ;;  %v351_v32 = vadd.f32 %v350_v4, %v349_v10 }
  0xe4   :  { %v357_v16 = vrot.slane %v356_v18, 1 }
  0xe5   :  { %v313_v38 = vpop.permute.xlu0 %312  ;;  %v362_v15 = vrot.slane %v361_v60, 2  ;;  %v330_v29 = vadd.f32 %v329_v14, %v328_v5 }
  0xe6   :  { %v322_v45 = vmul.f32 %v313_v38, %v860_v63  ;;  %v358_v39 = vadd.f32 %v357_v16, %v356_v18 }
  0xe7   :  { %v363_v30 = vadd.f32 %v362_v15, %v361_v60  ;;  %v388_v3 = vsel %vm149_vm3, %v337_v20, %v330_v29 }
  0xe8   :  { %v373_v51 = vsel %vm323_vm10, %v322_v45, 0.0 }
  0xe9   :  { %v374_v58 = vrot.slane %v373_v51, 4  ;;  %v364_v37 = vrot.slane %v363_v30, 1 }
  0xeb   :  { %v375_v12 = vadd.f32 %v374_v58, %v373_v51  ;;  %v365_v46 = vadd.f32 %v364_v37, %v363_v30  ;;  %v282_v51 = vld [vmem:[#allocation2] sm:$0xff] }
  0xed   :  { %v376_v22 = vrot.slane %v375_v12, 2 }
  0xef   :  { %v377_v33 = vadd.f32 %v376_v22, %v375_v12 }
  0xf1   :  { %v293_v52 = vpop.permute.xlu1 %292  ;;  %v378_v42 = vrot.slane %v377_v33, 1 }
  0xf2   :  { %v317_v55 = vmul.f32 %v293_v52, %v827_v24 }
  0xf3   :  { %v379_v48 = vadd.f32 %v378_v42, %v377_v33 }
  0xf4   :  { %v338_v2 = vsel %vm323_vm10, %v317_v55, 0.0  ;;  %v564_v55 = vrot.slane %v931_v36, 4 }
  0xf5   :  { %v339_v59 = vrot.slane %v338_v2, 4 }
  0xf6   :  { %v565_v6 = vadd.f32 %v564_v55, %v931_v36 }
  0xf7   :  { %v340_v62 = vadd.f32 %v339_v59, %v338_v2 }
  0xf8   :  { %v566_v5 = vrot.slane %v565_v6, 2 }
  0xf9   :  { %v341_v0 = vrot.slane %v340_v62, 2  ;;  %v309_v13 = vpop.permute.xlu1 %308 }
  0xfa   :  { %v321_v1 = vmul.f32 %v309_v13, %v865_v9 }
  0xfb   :  { %v342_v19 = vadd.f32 %v341_v0, %v340_v62  ;;  %v567_v62 = vadd.f32 %v566_v5, %v565_v6 }
  0xfc   :  { %v366_v23 = vsel %vm323_vm10, %v321_v1, 0.0 }
  0xfd   :  { %v343_v25 = vrot.slane %v342_v19, 1  ;;  %v367_v28 = vrot.slane %v366_v23, 4  ;;  %v568_v26 = vrot.slane %v567_v62, 1 }
  0xff   :  { %v344_v7 = vadd.f32 %v343_v25, %v342_v19  ;;  %v368_v31 = vadd.f32 %v367_v28, %v366_v23  ;;  %v569_v18 = vadd.f32 %v568_v26, %v567_v62 }
 0x101   :  { %v389_v34 = vsel %vm151_vm4, %v344_v7, %v388_v3  ;;  %v369_v35 = vrot.slane %v368_v31, 2  ;;  %v599_v25 = vsel %vm155_vm6, %v569_v18, %v922_v8 }
 0x102   :  { %v390_v38 = vsel %vm153_vm5, %v351_v32, %v389_v34 }
 0x103   :  { %v370_v40 = vadd.f32 %v369_v35, %v368_v31  ;;  %v391_v45 = vsel %vm155_vm6, %v358_v39, %v390_v38  ;;  %v514_v31 = vld [vmem:[#allocation3] sm:$0xff] }
 0x104   :  { %v392_v49 = vsel %vm157_vm7, %v365_v46, %v391_v45 }
 0x105   :  { %v371_v43 = vrot.slane %v370_v40, 1 }
 0x107   :  { %v372_v47 = vadd.f32 %v371_v43, %v370_v40 }
 0x109   :  { %v393_v50 = vsel %vm159_vm8, %v372_v47, %v392_v49 }
 0x10a   :  { %v394_v52 = vsel %vm161_vm9, %v379_v48, %v393_v50 }
 0x10b   :  { %v396_v53 = vadd.f32 %v394_v52, %v282_v51 }
 0x10d   :  { %397 = vst.msk [vmem:[#allocation2] sm:$0xff] %vm323_vm10, %v396_v53 }
 0x110   :  { %v536_v57 = vpop.xlane.xlu0 %535 }
 0x111   :  { %v533_v54 = vpop.xlane.xlu2 %532  ;;  %v576_v58 = vrot.slane %v536_v57, 4 }
 0x112   :  { %v570_v56 = vrot.slane %v533_v54, 4 }
 0x113   :  { %v577_v60 = vadd.f32 %v576_v58, %v536_v57 }
 0x114   :  { %v571_v2 = vadd.f32 %v570_v56, %v533_v54 }
 0x115   :  { %v578_v10 = vrot.slane %v577_v60, 2 }
 0x116   :  { %v572_v61 = vrot.slane %v571_v2, 2 }
 0x117   :  { %v579_v0 = vadd.f32 %v578_v10, %v577_v60 }
 0x118   :  { %v573_v11 = vadd.f32 %v572_v61, %v571_v2 }
 0x119   :  { %v401_v59 = vpop.permute.xlu2 %400  ;;  %v580_v19 = vrot.slane %v579_v0, 1 }
 0x11a   :  { %v574_v14 = vrot.slane %v573_v11, 1  ;;  %v431_v7 = vmul.f32 %v401_v59, %v833_v27 }
 0x11b   :  { %v581_v28 = vadd.f32 %v580_v19, %v579_v0 }
 0x11c   :  { %v575_v4 = vadd.f32 %v574_v14, %v573_v11  ;;  %v440_v37 = vsel %vm439_vm12, %v431_v7, 0.0 }
 0x11d   :  { %v441_v40 = vrot.slane %v440_v37, 4 }
 0x11e   :  { %v600_v30 = vsel %vm157_vm7, %v575_v4, %v599_v25 }
 0x11f   :  { %v601_v3 = vsel %vm159_vm8, %v581_v28, %v600_v30  ;;  %v442_v46 = vadd.f32 %v441_v40, %v440_v37 }
 0x121   :  { %v413_v12 = vpop.permute.xlu2 %412  ;;  %v443_v54 = vrot.slane %v442_v46, 2 }
 0x122   :  { %v434_v33 = vmul.f32 %v413_v12, %v849_v44 }
 0x123   :  { %v405_v36 = vpop.permute.xlu0 %404  ;;  %v444_v5 = vadd.f32 %v443_v54, %v442_v46 }
 0x124   :  { %v539_v13 = vpop.xlane.xlu1 %538  ;;  %v432_v29 = vmul.f32 %v405_v36, %v844_v41  ;;  %v461_v27 = vsel %vm439_vm12, %v434_v33, 0.0 }
 0x125   :  { %v582_v15 = vrot.slane %v539_v13, 4  ;;  %v462_v43 = vrot.slane %v461_v27, 4  ;;  %v445_v0 = vrot.slane %v444_v5, 1 }
 0x126   :  { %v447_v34 = vsel %vm439_vm12, %v432_v29, 0.0 }
 0x127   :  { %v583_v1 = vadd.f32 %v582_v15, %v539_v13  ;;  %v448_v38 = vrot.slane %v447_v34, 4  ;;  %v463_v51 = vadd.f32 %v462_v43, %v461_v27 }
 0x129   :  { %v584_v20 = vrot.slane %v583_v1, 2  ;;  %v417_v22 = vpop.permute.xlu2 %416  ;;  %v449_v44 = vadd.f32 %v448_v38, %v447_v34  ;;  %v464_v57 = vrot.slane %v463_v51, 2 }
 0x12a   :  { %v435_v39 = vmul.f32 %v417_v22, %v811_v17  ;;  %v446_v22 = vadd.f32 %v445_v0, %v444_v5 }
 0x12b   :  { %v585_v23 = vadd.f32 %v584_v20, %v583_v1  ;;  %v450_v17 = vrot.slane %v449_v44, 2  ;;  %v465_v62 = vadd.f32 %v464_v57, %v463_v51 }
 0x12c   :  { %v468_v45 = vsel %vm439_vm12, %v435_v39, 0.0 }
 0x12d   :  { %v586_v16 = vrot.slane %v585_v23, 1  ;;  %v469_v48 = vrot.slane %v468_v45, 4  ;;  %v451_v6 = vadd.f32 %v450_v17, %v449_v44  ;;  %v466_v1 = vrot.slane %v465_v62, 1  ;;  %v398_v44 = vld [vmem:[#allocation2] sm:$0xff] }
 0x12f   :  { %v587_v32 = vadd.f32 %v586_v16, %v585_v23  ;;  %v470_v56 = vadd.f32 %v469_v48, %v468_v45  ;;  %v452_v10 = vrot.slane %v451_v6, 1  ;;  %v467_v16 = vadd.f32 %v466_v1, %v465_v62 }
 0x131   :  { %v602_v35 = vsel %vm161_vm9, %v587_v32, %v601_v3  ;;  %v421_v8 = vpop.permute.xlu2 %420  ;;  %v471_v61 = vrot.slane %v470_v56, 2  ;;  %v453_v18 = vadd.f32 %v452_v10, %v451_v6 }
 0x132   :  { %v604_v41 = vadd.f32 %v602_v35, %v514_v31  ;;  %v436_v42 = vmul.f32 %v421_v8, %v820_v21 }
 0x133   :  { %v472_v14 = vadd.f32 %v471_v61, %v470_v56  ;;  %v504_v7 = vsel %vm149_vm3, %v453_v18, %v446_v22 }
 0x134   :  { %606 = vst.msk [vmem:[#allocation3] sm:$0xff] %vm17_vm11, %v604_v41  ;;  %v475_v49 = vsel %vm439_vm12, %v436_v42, 0.0 }
 0x135   :  { %v476_v55 = vrot.slane %v475_v49, 4  ;;  %v473_v28 = vrot.slane %v472_v14, 1 }
 0x137   :  { %v477_v60 = vadd.f32 %v476_v55, %v475_v49  ;;  %v474_v34 = vadd.f32 %v473_v28, %v472_v14 }
 0x139   :  { %v429_v47 = vpop.permute.xlu2 %428  ;;  %v478_v13 = vrot.slane %v477_v60, 2 }
 0x13a   :  { %v438_v50 = vmul.f32 %v429_v47, %v860_v63 }
 0x13b   :  { %v479_v23 = vadd.f32 %v478_v13, %v477_v60  ;;  %v624_v25 = vld [vmem:[#allocation3] sm:$0xff] }
 0x13c   :  { %v489_v52 = vsel %vm439_vm12, %v438_v50, 0.0  ;;  %v409_v53 = vpop.permute.xlu1 %408  ;;  %685 = vrcp.f32 %v624_v25  ;;  %v636_v17 = vand.u32 2147483648, %v624_v25  ;;  %vm630_vm14 = vweird.f32 %v624_v25 }
 0x13d   :  { %v433_v21 = vmul.f32 %v409_v53, %v827_v24  ;;  %v490_v58 = vrot.slane %v489_v52, 4  ;;  %v480_v3 = vrot.slane %v479_v23, 1 }
 0x13e   :  { %v637_v54 = vor.u32 1.1754944e-38, %v636_v17 }
 0x13f   :  { %v454_v2 = vsel %vm439_vm12, %v433_v21, 0.0  ;;  %v491_v11 = vadd.f32 %v490_v58, %v489_v52  ;;  %v481_v38 = vadd.f32 %v480_v3, %v479_v23  ;;  %v634_v52 = vand.u32 2147483647, %v624_v25 }
 0x140   :  { %v455_v59 = vrot.slane %v454_v2, 4 }
 0x141   :  { %v492_v19 = vrot.slane %v491_v11, 2  ;;  %vm635_vm0 = vcmp.eq.f32.partialorder %v634_v52, 8.507059e+37 }
 0x142   :  { %v456_v63 = vadd.f32 %v455_v59, %v454_v2  ;;  %v686_v39 = vpop.eup %685 }
 0x143   :  { %v493_v31 = vadd.f32 %v492_v19, %v491_v11  ;;  %v626_v46 = vmul.f32 %v686_v39, %v624_v25  ;;  %vm631_vm13 = vweird.f32 %v686_v39 }
 0x144   :  { %v457_v12 = vrot.slane %v456_v63, 2  ;;  %v425_v26 = vpop.permute.xlu1 %424  ;;  %vm632_vm15 = vmor %vm630_vm14, %vm631_vm13 }
 0x145   :  { %v437_v24 = vmul.f32 %v425_v26, %v865_v9  ;;  %v494_v8 = vrot.slane %v493_v31, 1  ;;  %v627_v48 = vsub.f32 1.0, %v626_v46 }
 0x146   :  { %v458_v15 = vadd.f32 %v457_v12, %v456_v63 }
 0x147   :  { %v482_v4 = vsel %vm439_vm12, %v437_v24, 0.0  ;;  %v495_v40 = vadd.f32 %v494_v8, %v493_v31  ;;  %v628_v49 = vmul.f32 %v686_v39, %v627_v48 }
 0x148   :  { %v459_v36 = vrot.slane %v458_v15, 1  ;;  %v483_v20 = vrot.slane %v482_v4, 4 }
 0x149   :  { %v629_v51 = vadd.f32 %v686_v39, %v628_v49 }
 0x14a   :  { %v460_v29 = vadd.f32 %v459_v36, %v458_v15  ;;  %v484_v30 = vadd.f32 %v483_v20, %v482_v4 }
 0x14b   :  { %v633_v53 = vsel %vm632_vm15, %v686_v39, %v629_v51 }
 0x14c   :  { %v505_v9 = vsel %vm151_vm4, %v460_v29, %v504_v7  ;;  %v485_v32 = vrot.slane %v484_v30, 2  ;;  %v638_v55 = vsel %vm635_vm0, %v637_v54, %v633_v53 }
 0x14d   :  { %v506_v33 = vsel %vm153_vm5, %v467_v16, %v505_v9 }
 0x14e   :  { %v486_v35 = vadd.f32 %v485_v32, %v484_v30  ;;  %v507_v41 = vsel %vm155_vm6, %v474_v34, %v506_v33 }
 0x14f   :  { %v508_v42 = vsel %vm157_vm7, %v481_v38, %v507_v41 }
 0x150   :  { %v487_v37 = vrot.slane %v486_v35, 1 }
 0x152   :  { %v488_v27 = vadd.f32 %v487_v37, %v486_v35 }
 0x154   :  { %v509_v43 = vsel %vm159_vm8, %v488_v27, %v508_v42 }
 0x155   :  { %v510_v45 = vsel %vm161_vm9, %v495_v40, %v509_v43 }
 0x156   :  { %v512_v47 = vadd.f32 %v510_v45, %v398_v44 }
 0x158   :  { %513 = vst.msk [vmem:[#allocation2] sm:$0xff] %vm439_vm12, %v512_v47 }
 0x15f   :  { %v610_v50 = vld [vmem:[#allocation2] sm:$0xff] }
 0x160   :  { %620 = vrot.lane.b32.xlu2 %v610_v50, %s718_s1  ;;  %616 = vrot.lane.b32.xlu0 %v610_v50, %s719_s12 }
 0x161   :  { %612 = vrot.lane.b32.xlu1 %v610_v50, %s720_s13 }
 0x169   :  { %641 = vperm.xlu1 %683, %v638_v55  }
 0x1ba   :  { %v621_v58 = vpop.permute.xlu2 %620 }
 0x1d2   :  { %v617_v57 = vpop.permute.xlu0 %616 }
 0x1d3   :  { %v613_v21 = vpop.permute.xlu1 %612 }
 0x1d4   :  { %v615_v56 = vadd.f32 %v613_v21, %v610_v50 }
 0x1d6   :  { %v619_v6 = vadd.f32 %v617_v57, %v615_v56 }
 0x1d8   :  { %v623_v2 = vadd.f32 %v621_v58, %v619_v6 }
 0x1db   :  { %v642_v59 = vpop.permute.xlu1 %641 }
 0x1dc   :  { %v644_v5 = vmul.f32 %v642_v59, %v623_v2 }
 0x1de   :  { %645 = vst.msk [vmem:[#allocation4] sm:$0xff] %vm84_vm1, %v644_v5 }
 0x1df   :  { %656 = dma.vmem_to_hbm [thread:$0]  %s652_s15, 128, %s654_s18, [#allocation5]  }
 0x1e0   :  { %711 = dma.done.wait [#allocation5], 128  }
 0x1e1   :  { %712 = vsyncadd [#allocation5], 4294967168 }
 0x1e2   :  { %661 = vsyncpa [#allocation5], 1 }

</bundles_post_ra>
